<compile_context>
chip_gen: v6e
topology: v6e:2x2x1
jax: 0.10.0
libtpu: 0.0.40
codegen_flags: <defaults>
</compile_context>

<pallas_src>
import functools

import jax
import jax.numpy as jnp
from jax.experimental import pallas as pl
from jax.experimental.pallas import tpu as pltpu

LANES = 128  # TPU lane width; padded hidden width inside the weight slab


def _round_up(n, m):
    return ((n + m - 1) // m) * m


def _net_kernel(x_ref, slab_ref, o_ref, *, S, A, offs):
    """One batch tile: 3 matmuls + 2 ReLUs; weights read as Ref-slices of the
    VMEM-resident slab (all slices are static, 8-row-aligned, full-lane)."""
    x = x_ref[...]                                       # (TB, S) f32

    w1 = slab_ref[pl.ds(offs["w1"], S), :]               # (S, 128)
    b1 = slab_ref[pl.ds(offs["b1"], 1), :]               # (1, 128)
    w2 = slab_ref[pl.ds(offs["w2"], LANES), :]            # (128, 128)
    b2 = slab_ref[pl.ds(offs["b2"], 1), :]               # (1, 128)
    w3 = slab_ref[pl.ds(offs["w3"], LANES), :]            # (128, 128) (cols >= A zero)
    b3 = slab_ref[pl.ds(offs["b3"], 1), :]               # (1, 128)

    h1 = jnp.dot(x, w1, preferred_element_type=jnp.float32) + b1
    h1 = jnp.maximum(h1, 0.0)

    h2 = jnp.dot(h1, w2, preferred_element_type=jnp.float32) + b2
    h2 = jnp.maximum(h2, 0.0)

    out = jnp.dot(h2, w3, preferred_element_type=jnp.float32) + b3   # (TB, 128)

    # Store only the valid action columns -> narrow HBM writeback.
    o_ref[...] = out[:, :A].astype(o_ref.dtype)


def _build_slab(params, S, H, A):
    """Pack w1,b1,w2,b2,w3,b3 into one (R, 128) f32 slab.

    Hidden dim is zero-padded to 128 lanes; all section offsets are multiples
    of 8 rows so every Ref slice in the kernel is sublane-aligned.
    """
    r_w1 = 0
    r_b1 = _round_up(r_w1 + S, 8)
    r_w2 = _round_up(r_b1 + 1, 8)
    r_b2 = _round_up(r_w2 + LANES, 8)
    r_w3 = _round_up(r_b2 + 1, 8)
    r_b3 = _round_up(r_w3 + LANES, 8)
    rows = _round_up(r_b3 + 1, 8)
    offs = {"w1": r_w1, "b1": r_b1, "w2": r_w2, "b2": r_b2, "w3": r_w3, "b3": r_b3}

    slab = jnp.zeros((rows, LANES), jnp.float32)
    slab = slab.at[r_w1:r_w1 + S, :H].set(params["w1"].astype(jnp.float32))
    slab = slab.at[r_b1, :H].set(params["b1"].reshape(H).astype(jnp.float32))
    slab = slab.at[r_w2:r_w2 + H, :H].set(params["w2"].astype(jnp.float32))
    slab = slab.at[r_b2, :H].set(params["b2"].reshape(H).astype(jnp.float32))
    slab = slab.at[r_w3:r_w3 + H, :A].set(params["w3"].astype(jnp.float32))
    slab = slab.at[r_b3, :A].set(params["b3"].reshape(A).astype(jnp.float32))
    return slab, offs


def net_forward(x, params, *, tb=1024):
    """MLP forward as a batch-tiled Pallas kernel.

    x: (B, state_dim) float32
    params: dict with w1 (S,H), b1 (1,H), w2 (H,H), b2 (1,H), w3 (H,A), b3 (1,A)
    Returns: (B, action_dim) float32 Q-values.
    """
    B, S = x.shape
    H = params["w1"].shape[1]
    A = params["w3"].shape[1]

    # Single 128-lane slab layout assumes these; fail loudly otherwise.
    assert S <= LANES, f"state_dim {S} > {LANES} not supported by this kernel"
    assert H <= LANES, f"hidden_dim {H} > {LANES} not supported by this kernel"
    assert A <= LANES, f"action_dim {A} > {LANES} not supported by this kernel"

    # Batch tile: multiple of 8 sublanes, no larger than the (padded) batch.
    B8 = _round_up(B, 8)
    tb = _round_up(max(8, min(tb, B8)), 8)
    # Prefer >= 2 grid steps so both TensorCores get work on v7x (neutral on
    # single-TC chips).  half is always >= 8, so tb stays valid.
    half = _round_up(pl.cdiv(B8, 2), 8)
    tb = min(tb, half)

    B_pad = _round_up(B, tb)
    if B_pad != B:
        x = jnp.pad(x, ((0, B_pad - B), (0, 0)))
    x = x.astype(jnp.float32)

    slab, offs = _build_slab(params, S, H, A)
    n_tiles = pl.cdiv(B_pad, tb)

    kernel = functools.partial(_net_kernel, S=S, A=A, offs=offs)

    out_padded = pl.pallas_call(
        kernel,
        out_shape=jax.ShapeDtypeStruct((B_pad, A), jnp.float32),
        grid=(n_tiles,),
        in_specs=[
            pl.BlockSpec((tb, S), lambda i: (i, 0)),       # streamed batch tile
            pl.BlockSpec(slab.shape, lambda i: (0, 0)),    # resident weight slab
        ],
        # Narrow output block: last dim == full array width (A), so the HBM
        # writeback is only A lanes per row instead of 128.
        out_specs=pl.BlockSpec((tb, A), lambda i: (i, 0)),
        compiler_params=pltpu.CompilerParams(
            dimension_semantics=("parallel",),             # shards tiles on v7x 2-TC
        ),
    )(x, slab)

    return out_padded[:B, :]


def init_params(key, state_dim=8, action_dim=4, hidden_dim=32):
    """Deterministic synthetic parameters (stored as (in, out); y = x @ w + b)."""
    ks = jax.random.split(key, 6)
    scale = 0.1
    return {
        "w1": scale * jax.random.normal(ks[0], (state_dim, hidden_dim), jnp.float32),
        "b1": scale * jax.random.normal(ks[1], (1, hidden_dim), jnp.float32),
        "w2": scale * jax.random.normal(ks[2], (hidden_dim, hidden_dim), jnp.float32),
        "b2": scale * jax.random.normal(ks[3], (1, hidden_dim), jnp.float32),
        "w3": scale * jax.random.normal(ks[4], (hidden_dim, action_dim), jnp.float32),
        "b3": scale * jax.random.normal(ks[5], (1, action_dim), jnp.float32),
    }


def net_forward_ref(x, p):
    """Pure-JAX reference for verification."""
    h1 = jnp.maximum(x @ p["w1"] + p["b1"], 0.0)
    h2 = jnp.maximum(h1 @ p["w2"] + p["b2"], 0.0)
    return h2 @ p["w3"] + p["b3"]


if __name__ == "__main__":
    key = jax.random.PRNGKey(0)
    k_x, k_p = jax.random.split(key)

    # Small demo: batch not a multiple of 8, exercises batch padding, the
    # >=2-grid-step cap (grid of 2 tiles of 104 rows), and the narrow output.
    batch, state_dim, action_dim, hidden_dim = 200, 8, 4, 32
    x = jax.random.normal(k_x, (batch, state_dim), jnp.float32)
    params = init_params(k_p, state_dim, action_dim, hidden_dim)

    out = net_forward(x, params)
    out = jax.block_until_ready(out)

    ref = net_forward_ref(x, params)
    assert out.shape == (batch, action_dim)
    assert jnp.allclose(out, ref, atol=1e-5, rtol=1e-5), "mismatch vs reference"

    # TODO(synk): DQN training loop (replay buffer, epsilon-greedy, TD loss,
    # optimizer, target-net sync) is host-side PyTorch logic in the original
    # file and is intentionally not ported to Pallas.
    print("KERNEL_OK")
</pallas_src>

<mosaic_0001>
module attributes {stable_mosaic.version = 11 : i64} {
  func.func @_net_kernel(%arg0: i32, %arg1: memref<104x8xf32, #tpu.memory_space<vmem>>, %arg2: memref<288x128xf32, #tpu.memory_space<vmem>>, %arg3: memref<104x4xf32, #tpu.memory_space<vmem>>) attributes {dimension_semantics = [#tpu.dimension_semantics<parallel>], iteration_bounds = array<i64: 2>, scalar_prefetch = 0 : i64, scratch_operands = 0 : i64, tpu.core_type = #tpu.core_type<tc>, window_params = [{transform_indices = @transform_0, window_bounds = array<i64: 104, 8>}, {pipeline_mode = #tpu.pipeline_mode<synchronous>, transform_indices = @transform_1, window_bounds = array<i64: 288, 128>}, {transform_indices = @transform_2, window_bounds = array<i64: 104, 4>}]} {
    %c0 = arith.constant 0 : index
    %c0_0 = arith.constant 0 : index
    %0 = vector.load %arg1[%c0, %c0_0] : memref<104x8xf32, #tpu.memory_space<vmem>>, vector<104x8xf32>
    %c0_1 = arith.constant 0 : index
    %c0_2 = arith.constant 0 : index
    %1 = vector.load %arg2[%c0_1, %c0_2] : memref<288x128xf32, #tpu.memory_space<vmem>>, vector<8x128xf32>
    %c8 = arith.constant 8 : index
    %c0_3 = arith.constant 0 : index
    %2 = vector.load %arg2[%c8, %c0_3] : memref<288x128xf32, #tpu.memory_space<vmem>>, vector<1x128xf32>
    %c16 = arith.constant 16 : index
    %c0_4 = arith.constant 0 : index
    %3 = vector.load %arg2[%c16, %c0_4] : memref<288x128xf32, #tpu.memory_space<vmem>>, vector<128x128xf32>
    %c144 = arith.constant 144 : index
    %c0_5 = arith.constant 0 : index
    %4 = vector.load %arg2[%c144, %c0_5] : memref<288x128xf32, #tpu.memory_space<vmem>>, vector<1x128xf32>
    %c152 = arith.constant 152 : index
    %c0_6 = arith.constant 0 : index
    %5 = vector.load %arg2[%c152, %c0_6] : memref<288x128xf32, #tpu.memory_space<vmem>>, vector<128x128xf32>
    %c280 = arith.constant 280 : index
    %c0_7 = arith.constant 0 : index
    %6 = vector.load %arg2[%c280, %c0_7] : memref<288x128xf32, #tpu.memory_space<vmem>>, vector<1x128xf32>
    %cst = arith.constant dense<0.000000e+00> : vector<104x128xf32>
    %7 = tpu.matmul %0, %1, %cst {dimension_numbers = #tpu.dot_dimension_numbers<[1], [0], [0], [1], [0, 0, 1, 1], [], []>} : vector<104x8xf32>, vector<8x128xf32>, vector<104x128xf32> -> vector<104x128xf32>
    %8 = vector.broadcast %2 : vector<1x128xf32> to vector<104x128xf32>
    %9 = arith.addf %7, %8 : vector<104x128xf32>
    %cst_8 = arith.constant 0.000000e+00 : f32
    %10 = vector.broadcast %cst_8 : f32 to vector<104x128xf32>
    %11 = arith.maximumf %9, %10 : vector<104x128xf32>
    %cst_9 = arith.constant dense<0.000000e+00> : vector<104x128xf32>
    %12 = tpu.matmul %11, %3, %cst_9 {dimension_numbers = #tpu.dot_dimension_numbers<[1], [0], [0], [1], [0, 0, 1, 1], [], []>} : vector<104x128xf32>, vector<128x128xf32>, vector<104x128xf32> -> vector<104x128xf32>
    %13 = vector.broadcast %4 : vector<1x128xf32> to vector<104x128xf32>
    %14 = arith.addf %12, %13 : vector<104x128xf32>
    %cst_10 = arith.constant 0.000000e+00 : f32
    %15 = vector.broadcast %cst_10 : f32 to vector<104x128xf32>
    %16 = arith.maximumf %14, %15 : vector<104x128xf32>
    %cst_11 = arith.constant dense<0.000000e+00> : vector<104x128xf32>
    %17 = tpu.matmul %16, %5, %cst_11 {dimension_numbers = #tpu.dot_dimension_numbers<[1], [0], [0], [1], [0, 0, 1, 1], [], []>} : vector<104x128xf32>, vector<128x128xf32>, vector<104x128xf32> -> vector<104x128xf32>
    %18 = vector.broadcast %6 : vector<1x128xf32> to vector<104x128xf32>
    %19 = arith.addf %17, %18 : vector<104x128xf32>
    %20 = vector.extract_strided_slice %19 {offsets = [0, 0], sizes = [104, 4], strides = [1, 1]} : vector<104x128xf32> to vector<104x4xf32>
    %c0_12 = arith.constant 0 : index
    %c0_13 = arith.constant 0 : index
    %21 = vector.load %arg3[%c0_12, %c0_13] : memref<104x4xf32, #tpu.memory_space<vmem>>, vector<104x4xf32>
    tpu.vector_store %arg3[%c0_12, %c0_13], %20 {strides = array<i32>} : memref<104x4xf32, #tpu.memory_space<vmem>>, vector<104x4xf32>,
    return
  }
  func.func @transform_0(%arg0: i32) -> (i32, i32) {
    %c0_i32 = arith.constant 0 : i32
    %c0_i32_0 = arith.constant 0 : i32
    return %arg0, %c0_i32 : i32, i32
  }
  func.func @transform_1(%arg0: i32) -> (i32, i32) {
    %c0_i32 = arith.constant 0 : i32
    %c0_i32_0 = arith.constant 0 : i32
    %c0_i32_1 = arith.constant 0 : i32
    return %c0_i32, %c0_i32_0 : i32, i32
  }
  func.func @transform_2(%arg0: i32) -> (i32, i32) {
    %c0_i32 = arith.constant 0 : i32
    %c0_i32_0 = arith.constant 0 : i32
    return %arg0, %c0_i32 : i32, i32
  }
}

</mosaic_0001>

<bundles_post_ra>
// kernel: tpu_custom_call.1
= control target key start
LH: loop header
LB: loop body
LE: loop exit
PB: predicated region body
PF: predicated region fallthrough
CT: control target
= control target key end

     0   :  { %7 = vsyncpa [#allocation3], 0  ;;  %s1126_s9 = smov 0   ;;  %s1369_s0 = inlined_call_operand.vmem [shape: f32[208,8], index: 0, kind: input, shape index: {}]   ;;  %s1370_s1 = inlined_call_operand.hbm [shape: f32[288,128], index: 1, kind: input, shape index: {}]   ;;  %s1371_s2 = inlined_call_operand.vmem [shape: f32[208,4], index: 2, kind: output, shape index: {}]  }
   0x1 LB: > { %s761_s10 = sadd.s32 4294967295, %s1104_s9   ;;  %p763_p0 = scmp.ge.s32.totalorder %s1104_s9, 1  ;;  %s1104_s9 = sphi %s1126_s9, %s13_s9  }
   0x2   : > { %p91_p1 = scmp.lt.s32.totalorder %s1104_s9, 3  ;;  %s1106_s11 = smov [#allocation2]  }
   0x3   : > { %s103_s12 = sshll.u32 %s1106_s11, 4  ;;  %p1138_p3 = scmp.eq.s32.totalorder %s761_s10, 0  ;;  %s104_s12 = int_to_ptr.vmem [resolvable:$true] %s103_s12 }
   0x4   : > { %p1134_p2 = pnand %p763_p0, %p91_p1  ;;  %s1079_s15 = scalar_lea.vmem %s104_s12, 4608 }
   0x5   : > { %p1080_p7 = scmp.ne.s32.totalorder %s104_s12, %s1079_s15  ;;  %p1087_p10 = scmp.lt.s32.totalorder %s104_s12, %s104_s12 }
   0x6   : > { %p1049_p4 = pneg %p1134_p2  ;;  %p1088_p11 = scmp.lt.s32.totalorder %s1079_s15, %s1079_s15 }
   0x8   : > { %p1050_p5 = pnand %p1138_p3, %p1049_p4  ;;  %p1089_p12 = por %p1088_p11, %p1087_p10 }
   0xa   : > { %p1070_p6 = pneg %p1050_p5 }
   0xc   : > { %p1082_p8 = pnand %p1080_p7, %p1070_p6 }
   0xe   : > { %p1083_p9 = pneg %p1082_p8 }
  0x10   : > { %p1090_p13 = pnand %p1089_p12, %p1083_p9 }
  0x12   : > { %1093 = shalt.err (!%p1090_p13)
}
  0x13   : > { %s1107_s16 = smov 128   ;;  %s1108_s17 = smov 8  }
  0x14   : > { %1052 = dma.hbm_to_vmem [thread:$0]  (!%p1050_p5), %s1370_s1, 4608, %s104_s12, [#allocation3], %s1107_s16, %s1107_s16, %s1108_s17  }
  0x15   : > { %128 = sbr.rel (%p1134_p2) target bundleno = 673 (0x2a1), region = 28 }
  0x1a   : > { %1099 = dma.done.wait (%p1138_p3), [#allocation3], 4608  }
  0x1b   : > { %1101 = vsyncadd (%p1138_p3), [#allocation3], 4294962688  ;;  %s150_s20 = smul.u32 13, %s761_s10  ;;  %v1109_v0 = vmov 0.0   ;;  %vm1110_vm0 = vmmov 0   ;;  %vm215_vm1 = vcmask 64512  }
  0x1c   : > { %860 = vmatprep.subr.mxu0 %v1109_v0  ;;  %862 = vmatprep.mubr.msk.f32.mxu0 %vm1110_vm0, %v1109_v0  ;;  %v175_v1 = vld [vmem:[#allocation2] sm:$0xff]  ;;  %v192_v3 = vld [vmem:[#allocation2 + $0x88] sm:$0xff]  ;;  %v190_v8 = vld [vmem:[#allocation2 + $0x78] sm:$0xff]  ;;  %vm679_vm2 = vcmask 31744  }
  0x1d   : > { %p151_p0 = scmp.lt.s32.totalorder %s150_s20, 25  ;;  %1043 = vmatprep.subr.mxu1 %v1109_v0  ;;  %886 = vmatprep.mubr.msk.f32.mxu1 %vm1110_vm0, %v1109_v0  ;;  %v191_v6 = vld [vmem:[#allocation2 + $0x80] sm:$0xff]  ;;  %v189_v10 = vld [vmem:[#allocation2 + $0x70] sm:$0xff]  ;;  %v188_v12 = vld [vmem:[#allocation2 + $0x68] sm:$0xff] }
  0x1e   : > { %861 = vmatpush3.msra.mxu0 %v175_v1  ;;  %1044 = vmatpush3.msra.mxu1 %v175_v1  ;;  %v187_v14 = vld [vmem:[#allocation2 + $0x60] sm:$0xff]  ;;  %v186_v16 = vld [vmem:[#allocation2 + $0x58] sm:$0xff]  ;;  %v185_v18 = vld [vmem:[#allocation2 + $0x50] sm:$0xff] }
  0x1f   : > { %s1375_s20 = smov (!%p151_p0, %s150_s20), 25  ;;  %901 = vmatprep.subr.mxu1 %v1109_v0  ;;  %972 = vmatprep.subr.mxu0 %v1109_v0  ;;  %v184_v20 = vld [vmem:[#allocation2 + $0x48] sm:$0xff]  ;;  %v183_v22 = vld [vmem:[#allocation2 + $0x40] sm:$0xff]  ;;  %v182_v23 = vld [vmem:[#allocation2 + $0x38] sm:$0xff] }
  0x20   : > { %s768_s21 = sshll.u32 %s1375_s20, 3  ;;  %v181_v25 = vld [vmem:[#allocation2 + $0x30] sm:$0xff]  ;;  %v180_v26 = vld [vmem:[#allocation2 + $0x28] sm:$0xff]  ;;  %v179_v28 = vld [vmem:[#allocation2 + $0x20] sm:$0xff] }
  0x21   : > { %s1169_s24 = scalar_lea.vmem %s1369_s0, %s768_s21  ;;  %v178_v29 = vld [vmem:[#allocation2 + $0x18] sm:$0xff]  ;;  %v177_v30 = vld [vmem:[#allocation2 + $0x10] sm:$0xff]  ;;  %v208_v32 = vld [vmem:[#allocation2 + $0x108] sm:$0xff]  ;;  %s1338_s27 = scalar_lea.vmem %s1371_s2, %s768_s21 }
  0x22   : > { %v162_v2 = vld [vmem:[%s1169_s24] sm:$0xff]  ;;  %v163_v4 = vld [vmem:[%s1169_s24 + $0x8] sm:$0xff]  ;;  %v164_v9 = vld [vmem:[%s1169_s24 + $0x10] sm:$0xff] }
  0x23   : > { %863 = vmatmul.mubr.msk.f32.vlgmr.msra.gmra.mxu0 %vm215_vm1, %v162_v2  ;;  %v170_v5 = vld [vmem:[%s1169_s24 + $0x40] sm:$0xff]  ;;  %v171_v7 = vld [vmem:[%s1169_s24 + $0x48] sm:$0xff]  ;;  %v172_v11 = vld [vmem:[%s1169_s24 + $0x50] sm:$0xff] }
  0x24   : > { %865 = vmatprep.mubr.msk.f32.mxu0 %vm1110_vm0, %v1109_v0  ;;  %887 = vmatmul.mubr.msk.f32.vlgmr.msra.gmra.mxu1 %vm215_vm1, %v170_v5  ;;  %v165_v13 = vld [vmem:[%s1169_s24 + $0x18] sm:$0xff]  ;;  %v166_v17 = vld [vmem:[%s1169_s24 + $0x20] sm:$0xff]  ;;  %v167_v21 = vld [vmem:[%s1169_s24 + $0x28] sm:$0xff] }
  0x25   : > { %889 = vmatprep.mubr.msk.f32.mxu1 %vm1110_vm0, %v1109_v0  ;;  %902 = vmatpush3.msra.mxu1 %v192_v3  ;;  %v173_v15 = vld [vmem:[%s1169_s24 + $0x58] sm:$0xff]  ;;  %v174_v19 = vld [vmem:[%s1169_s24 + $0x60] sm:$0xff]  ;;  %v168_v24 = vld [vmem:[%s1169_s24 + $0x30] sm:$0xff] }
  0x26   : > { %903 = vmatprep.subr.mxu1 %v1109_v0  ;;  %v169_v27 = vld [vmem:[%s1169_s24 + $0x38] sm:$0xff]  ;;  %v209_v31 = vld [vmem:[#allocation2 + $0x110] sm:$0xff]  ;;  %v207_v33 = vld [vmem:[#allocation2 + $0x100] sm:$0xff] }
  0x27   : > { %866 = vmatmul.mubr.msk.f32.gmra.mxu0 %vm215_vm1, %v163_v4  ;;  %904 = vmatpush3.msra.mxu1 %v191_v6  ;;  %v206_v34 = vld [vmem:[#allocation2 + $0xf8] sm:$0xff]  ;;  %v205_v35 = vld [vmem:[#allocation2 + $0xf0] sm:$0xff]  ;;  %v204_v36 = vld [vmem:[#allocation2 + $0xe8] sm:$0xff] }
  0x28   : > { %868 = vmatprep.mubr.msk.f32.mxu0 %vm1110_vm0, %v1109_v0  ;;  %890 = vmatmul.mubr.msk.f32.gmra.mxu1 %vm215_vm1, %v171_v7  ;;  %v203_v37 = vld [vmem:[#allocation2 + $0xe0] sm:$0xff]  ;;  %v202_v38 = vld [vmem:[#allocation2 + $0xd8] sm:$0xff]  ;;  %v201_v39 = vld [vmem:[#allocation2 + $0xd0] sm:$0xff] }
  0x29   : > { %905 = vmatprep.subr.mxu1 %v1109_v0  ;;  %892 = vmatprep.mubr.msk.f32.mxu1 %vm1110_vm0, %v1109_v0  ;;  %v200_v40 = vld [vmem:[#allocation2 + $0xc8] sm:$0xff]  ;;  %v199_v41 = vld [vmem:[#allocation2 + $0xc0] sm:$0xff]  ;;  %v198_v42 = vld [vmem:[#allocation2 + $0xb8] sm:$0xff] }
  0x2a   : > { %906 = vmatpush3.msra.mxu1 %v190_v8  ;;  %973 = vmatpush3.msra.mxu0 %v209_v31  ;;  %v197_v43 = vld [vmem:[#allocation2 + $0xb0] sm:$0xff]  ;;  %v196_v44 = vld [vmem:[#allocation2 + $0xa8] sm:$0xff] }
  0x2b   : > { %869 = vmatmul.mubr.msk.f32.gmra.mxu0 %vm215_vm1, %v164_v9  ;;  %907 = vmatprep.subr.mxu1 %v1109_v0  ;;  %v1254_v45 = vld [vmem:[#allocation2 + $0x8] ss:$0 sm:$0xff] }
  0x2c   : > { %871 = vmatprep.mubr.msk.f32.mxu0 %vm1110_vm0, %v1109_v0  ;;  %908 = vmatpush3.msra.mxu1 %v189_v10 }
  0x2d   : > { %893 = vmatmul.mubr.msk.f32.gmra.mxu1 %vm215_vm1, %v172_v11  ;;  %909 = vmatprep.subr.mxu1 %v1109_v0 }
  0x2e   : > { %895 = vmatprep.mubr.msk.f32.mxu1 %vm1110_vm0, %v1109_v0  ;;  %910 = vmatpush3.msra.mxu1 %v188_v12 }
  0x2f   : > { %872 = vmatmul.mubr.msk.f32.gmra.mxu0 %vm215_vm1, %v165_v13  ;;  %911 = vmatprep.subr.mxu1 %v1109_v0 }
  0x30   : > { %874 = vmatprep.mubr.msk.f32.mxu0 %vm1110_vm0, %v1109_v0  ;;  %912 = vmatpush3.msra.mxu1 %v187_v14 }
  0x31   : > { %896 = vmatmul.mubr.msk.f32.gmra.mxu1 %vm215_vm1, %v173_v15  ;;  %913 = vmatprep.subr.mxu1 %v1109_v0 }
  0x32   : > { %898 = vmatprep.mubr.msk.f32.mxu1 %vm1110_vm0, %v1109_v0  ;;  %914 = vmatpush3.msra.mxu1 %v186_v16 }
  0x33   : > { %875 = vmatmul.mubr.msk.f32.gmra.mxu0 %vm215_vm1, %v166_v17  ;;  %915 = vmatprep.subr.mxu1 %v1109_v0 }
  0x34   : > { %877 = vmatprep.mubr.msk.f32.mxu0 %vm1110_vm0, %v1109_v0  ;;  %916 = vmatpush3.msra.mxu1 %v185_v18 }
  0x35   : > { %899 = vmatmul.mubr.msk.f32.gmra.mxu1 %vm215_vm1, %v174_v19  ;;  %917 = vmatprep.subr.mxu1 %v1109_v0 }
  0x36   : > { %918 = vmatpush3.msra.mxu1 %v184_v20  ;;  %933 = vmatprep.mubr.msk.f32.mxu1 %vm1110_vm0, %v1109_v0 }
  0x37   : > { %878 = vmatmul.mubr.msk.f32.gmra.mxu0 %vm215_vm1, %v167_v21  ;;  %919 = vmatprep.subr.mxu1 %v1109_v0 }
  0x38   : > { %880 = vmatprep.mubr.msk.f32.mxu0 %vm1110_vm0, %v1109_v0  ;;  %920 = vmatpush3.msra.mxu1 %v183_v22 }
  0x39   : > { %921 = vmatprep.subr.mxu1 %v1109_v0  ;;  %974 = vmatprep.subr.mxu0 %v1109_v0 }
  0x3a   : > { %922 = vmatpush3.msra.mxu1 %v182_v23  ;;  %975 = vmatpush3.msra.mxu0 %v208_v32 }
  0x3b   : > { %881 = vmatmul.mubr.msk.f32.gmra.mxu0 %vm215_vm1, %v168_v24  ;;  %923 = vmatprep.subr.mxu1 %v1109_v0 }
  0x3c   : > { %883 = vmatprep.mubr.msk.f32.mxu0 %vm1110_vm0, %v1109_v0  ;;  %924 = vmatpush3.msra.mxu1 %v181_v25 }
  0x3d   : > { %925 = vmatprep.subr.mxu1 %v1109_v0  ;;  %976 = vmatprep.subr.mxu0 %v1109_v0 }
  0x3e   : > { %926 = vmatpush3.msra.mxu1 %v180_v26  ;;  %977 = vmatpush3.msra.mxu0 %v207_v33 }
  0x3f   : > { %884 = vmatmul.mubr.msk.f32.gmra.mxu0 %vm215_vm1, %v169_v27  ;;  %927 = vmatprep.subr.mxu1 %v1109_v0 }
  0x40   : > { %1004 = vmatprep.mubr.msk.f32.mxu0 %vm1110_vm0, %v1109_v0  ;;  %928 = vmatpush3.msra.mxu1 %v179_v28 }
  0x41   : > { %929 = vmatprep.subr.mxu1 %v1109_v0  ;;  %978 = vmatprep.subr.mxu0 %v1109_v0 }
  0x42   : > { %930 = vmatpush3.msra.mxu1 %v178_v29  ;;  %979 = vmatpush3.msra.mxu0 %v206_v34 }
  0x43   : > { %931 = vmatprep.subr.mxu1 %v1109_v0  ;;  %980 = vmatprep.subr.mxu0 %v1109_v0 }
  0x44   : > { %932 = vmatpush3.msra.mxu1 %v177_v30  ;;  %981 = vmatpush3.msra.mxu0 %v205_v35  ;;  %v195_v35 = vld [vmem:[#allocation2 + $0xa0] sm:$0xff] }
  0x45   : > { %982 = vmatprep.subr.mxu0 %v1109_v0 }
  0x46   : > { %983 = vmatpush3.msra.mxu0 %v204_v36  ;;  %v194_v36 = vld [vmem:[#allocation2 + $0x98] sm:$0xff] }
  0x47   : > { %984 = vmatprep.subr.mxu0 %v1109_v0 }
  0x48   : > { %985 = vmatpush3.msra.mxu0 %v203_v37  ;;  %v1294_v37 = vld [vmem:[#allocation2 + $0x90] ss:$0 sm:$0xff] }
  0x49   : > { %986 = vmatprep.subr.mxu0 %v1109_v0 }
  0x4a   : > { %987 = vmatpush3.msra.mxu0 %v202_v38 }
  0x4b   : > { %988 = vmatprep.subr.mxu0 %v1109_v0 }
  0x4c   : > { %989 = vmatpush3.msra.mxu0 %v201_v39 }
  0x4d   : > { %990 = vmatprep.subr.mxu0 %v1109_v0 }
  0x4e   : > { %991 = vmatpush3.msra.mxu0 %v200_v40 }
  0x4f   : > { %992 = vmatprep.subr.mxu0 %v1109_v0 }
  0x50   : > { %993 = vmatpush3.msra.mxu0 %v199_v41 }
  0x51   : > { %994 = vmatprep.subr.mxu0 %v1109_v0 }
  0x52   : > { %995 = vmatpush3.msra.mxu0 %v198_v42 }
  0x53   : > { %996 = vmatprep.subr.mxu0 %v1109_v0 }
  0x54   : > { %997 = vmatpush3.msra.mxu0 %v197_v43 }
  0x55   : > { %998 = vmatprep.subr.mxu0 %v1109_v0 }
  0x56   : > { %999 = vmatpush3.msra.mxu0 %v196_v44 }
  0x57   : > { %1000 = vmatprep.subr.mxu0 %v1109_v0 }
  0x58   : > { %1001 = vmatpush3.msra.mxu0 %v195_v35 }
  0x59   : > { %1002 = vmatprep.subr.mxu0 %v1109_v0 }
  0x5a   : > { %1003 = vmatpush3.msra.mxu0 %v194_v36 }
  0xe3   : > { %v321_v46 = vpop.f32.mrf.mxu0 }
  0xe4   : > { %v322_v47 = vadd.f32 %v1254_v45, %v321_v46  ;;  %v361_v49 = vpop.f32.mrf.mxu1 }
  0xe5   : > { %v864_v48 = vpop.f32.mrf.mxu0  ;;  %v362_v23 = vadd.f32 %v1254_v45, %v361_v49 }
  0xe6   : > { %v385_v50 = vmax.f32 %v322_v47, 0.0  ;;  %v888_v52 = vpop.f32.mrf.mxu1 }
  0xe7   : > { %v326_v51 = vpop.f32.mrf.mxu0  ;;  %v393_v26 = vmax.f32 %v362_v23, 0.0 }
  0xe8   : > { %v327_v53 = vadd.f32 %v1254_v45, %v326_v51  ;;  %934 = vmatmul.mubr.f32.vlgmr.msra.gmra.mxu1 %v385_v50  ;;  %v366_v55 = vpop.f32.mrf.mxu1 }
  0xe9   : > { %v867_v54 = vpop.f32.mrf.mxu0  ;;  %936 = vmatprep.mubr.msk.f32.mxu1 %vm1110_vm0, %v1109_v0  ;;  %v367_v27 = vadd.f32 %v1254_v45, %v366_v55 }
  0xea   : > { %v386_v56 = vmax.f32 %v327_v53, 0.0  ;;  %v891_v58 = vpop.f32.mrf.mxu1 }
  0xeb   : > { %v331_v57 = vpop.f32.mrf.mxu0  ;;  %v394_v28 = vmax.f32 %v367_v27, 0.0  ;;  %v785_v27 = vld [vmem:[#allocation2 + $0x118] ss:$0 sm:$0xff] }
  0xec   : > { %v332_v59 = vadd.f32 %v1254_v45, %v331_v57  ;;  %937 = vmatmul.mubr.f32.gmra.mxu1 %v386_v56 }
  0xed   : > { %v870_v60 = vpop.f32.mrf.mxu0  ;;  %939 = vmatprep.mubr.msk.f32.mxu1 %vm1110_vm0, %v1109_v0  ;;  %v371_v61 = vpop.f32.mrf.mxu1 }
  0xee   : > { %v387_v62 = vmax.f32 %v332_v59, 0.0  ;;  %v372_v29 = vadd.f32 %v1254_v45, %v371_v61 }
  0xef   : > { %v336_v63 = vpop.f32.mrf.mxu0  ;;  %v894_v1 = vpop.f32.mrf.mxu1 }
  0xf0   : > { %v337_v2 = vadd.f32 %v1254_v45, %v336_v63  ;;  %940 = vmatmul.mubr.f32.gmra.mxu1 %v387_v62  ;;  %v395_v30 = vmax.f32 %v372_v29, 0.0 }
  0xf1   : > { %v873_v3 = vpop.f32.mrf.mxu0  ;;  %942 = vmatprep.mubr.msk.f32.mxu1 %vm1110_vm0, %v1109_v0  ;;  %v376_v4 = vpop.f32.mrf.mxu1 }
  0xf2   : > { %v388_v5 = vmax.f32 %v337_v2, 0.0  ;;  %v377_v31 = vadd.f32 %v1254_v45, %v376_v4 }
  0xf3   : > { %v341_v6 = vpop.f32.mrf.mxu0  ;;  %v897_v7 = vpop.f32.mrf.mxu1 }
  0xf4   : > { %v342_v8 = vadd.f32 %v1254_v45, %v341_v6  ;;  %943 = vmatmul.mubr.f32.gmra.mxu1 %v388_v5  ;;  %v396_v32 = vmax.f32 %v377_v31, 0.0 }
  0xf5   : > { %v876_v9 = vpop.f32.mrf.mxu0  ;;  %945 = vmatprep.mubr.msk.f32.mxu1 %vm1110_vm0, %v1109_v0  ;;  %v381_v10 = vpop.f32.mrf.mxu1 }
  0xf6   : > { %v389_v11 = vmax.f32 %v342_v8, 0.0  ;;  %v382_v33 = vadd.f32 %v1254_v45, %v381_v10 }
  0xf7   : > { %v346_v12 = vpop.f32.mrf.mxu0  ;;  %v900_v13 = vpop.f32.mrf.mxu1 }
  0xf8   : > { %v347_v14 = vadd.f32 %v1254_v45, %v346_v12  ;;  %946 = vmatmul.mubr.f32.gmra.mxu1 %v389_v11  ;;  %v397_v34 = vmax.f32 %v382_v33, 0.0 }
  0xf9   : > { %v879_v15 = vpop.f32.mrf.mxu0  ;;  %948 = vmatprep.mubr.msk.f32.mxu1 %vm1110_vm0, %v1109_v0 }
  0xfa   : > { %v390_v16 = vmax.f32 %v347_v14, 0.0 }
  0xfb   : > { %v351_v17 = vpop.f32.mrf.mxu0 }
  0xfc   : > { %v352_v18 = vadd.f32 %v1254_v45, %v351_v17  ;;  %949 = vmatmul.mubr.f32.gmra.mxu1 %v390_v16 }
  0xfd   : > { %v882_v19 = vpop.f32.mrf.mxu0  ;;  %951 = vmatprep.mubr.msk.f32.mxu1 %vm1110_vm0, %v1109_v0 }
  0xfe   : > { %v391_v20 = vmax.f32 %v352_v18, 0.0 }
  0xff   : > { %v356_v21 = vpop.f32.mrf.mxu0 }
 0x100   : > { %v357_v22 = vadd.f32 %v1254_v45, %v356_v21  ;;  %952 = vmatmul.mubr.f32.gmra.mxu1 %v391_v20 }
 0x101   : > { %v885_v24 = vpop.f32.mrf.mxu0  ;;  %954 = vmatprep.mubr.msk.f32.mxu1 %vm1110_vm0, %v1109_v0 }
 0x102   : > { %v392_v25 = vmax.f32 %v357_v22, 0.0 }
 0x104   : > { %955 = vmatmul.mubr.f32.gmra.mxu1 %v392_v25 }
 0x105   : > { %957 = vmatprep.mubr.msk.f32.mxu1 %vm1110_vm0, %v1109_v0 }
 0x108   : > { %958 = vmatmul.mubr.f32.gmra.mxu1 %v393_v26 }
 0x109   : > { %960 = vmatprep.mubr.msk.f32.mxu1 %vm1110_vm0, %v1109_v0 }
 0x10c   : > { %961 = vmatmul.mubr.f32.gmra.mxu1 %v394_v28 }
 0x10d   : > { %963 = vmatprep.mubr.msk.f32.mxu1 %vm1110_vm0, %v1109_v0 }
 0x110   : > { %964 = vmatmul.mubr.f32.gmra.mxu1 %v395_v30 }
 0x111   : > { %966 = vmatprep.mubr.msk.f32.mxu1 %vm1110_vm0, %v1109_v0 }
 0x114   : > { %967 = vmatmul.mubr.f32.gmra.mxu1 %v396_v32 }
 0x115   : > { %969 = vmatprep.mubr.msk.f32.mxu1 %vm1110_vm0, %v1109_v0 }
 0x118   : > { %970 = vmatmul.mubr.f32.gmra.mxu1 %v397_v34 }
 0x1a8   : > { %v468_v38 = vpop.f32.mrf.mxu1 }
 0x1a9   : > { %v469_v39 = vadd.f32 %v1294_v37, %v468_v38 }
 0x1aa   : > { %v935_v40 = vpop.f32.mrf.mxu1 }
 0x1ab   : > { %v532_v41 = vmax.f32 %v469_v39, 0.0 }
 0x1ac   : > { %v473_v42 = vpop.f32.mrf.mxu1 }
 0x1ad   : > { %v474_v43 = vadd.f32 %v1294_v37, %v473_v42  ;;  %1005 = vmatmul.mubr.f32.vlgmr.msra.gmra.mxu0 %v532_v41 }
 0x1ae   : > { %v938_v44 = vpop.f32.mrf.mxu1  ;;  %1007 = vmatprep.mubr.msk.f32.mxu0 %vm1110_vm0, %v1109_v0 }
 0x1af   : > { %v533_v45 = vmax.f32 %v474_v43, 0.0 }
 0x1b0   : > { %v478_v46 = vpop.f32.mrf.mxu1 }
 0x1b1   : > { %v479_v47 = vadd.f32 %v1294_v37, %v478_v46  ;;  %1008 = vmatmul.mubr.f32.gmra.mxu0 %v533_v45 }
 0x1b2   : > { %v941_v48 = vpop.f32.mrf.mxu1  ;;  %1010 = vmatprep.mubr.msk.f32.mxu0 %vm1110_vm0, %v1109_v0 }
 0x1b3   : > { %v534_v49 = vmax.f32 %v479_v47, 0.0 }
 0x1b4   : > { %v483_v50 = vpop.f32.mrf.mxu1 }
 0x1b5   : > { %v484_v51 = vadd.f32 %v1294_v37, %v483_v50  ;;  %1011 = vmatmul.mubr.f32.gmra.mxu0 %v534_v49 }
 0x1b6   : > { %v944_v52 = vpop.f32.mrf.mxu1  ;;  %1013 = vmatprep.mubr.msk.f32.mxu0 %vm1110_vm0, %v1109_v0 }
 0x1b7   : > { %v535_v53 = vmax.f32 %v484_v51, 0.0 }
 0x1b8   : > { %v488_v54 = vpop.f32.mrf.mxu1 }
 0x1b9   : > { %v489_v55 = vadd.f32 %v1294_v37, %v488_v54  ;;  %1014 = vmatmul.mubr.f32.gmra.mxu0 %v535_v53 }
 0x1ba   : > { %v947_v56 = vpop.f32.mrf.mxu1  ;;  %1016 = vmatprep.mubr.msk.f32.mxu0 %vm1110_vm0, %v1109_v0 }
 0x1bb   : > { %v536_v57 = vmax.f32 %v489_v55, 0.0 }
 0x1bc   : > { %v493_v58 = vpop.f32.mrf.mxu1 }
 0x1bd   : > { %v494_v59 = vadd.f32 %v1294_v37, %v493_v58  ;;  %1017 = vmatmul.mubr.f32.gmra.mxu0 %v536_v57 }
 0x1be   : > { %v950_v60 = vpop.f32.mrf.mxu1  ;;  %1019 = vmatprep.mubr.msk.f32.mxu0 %vm1110_vm0, %v1109_v0 }
 0x1bf   : > { %v537_v61 = vmax.f32 %v494_v59, 0.0 }
 0x1c0   : > { %v498_v62 = vpop.f32.mrf.mxu1 }
 0x1c1   : > { %v499_v63 = vadd.f32 %v1294_v37, %v498_v62  ;;  %1020 = vmatmul.mubr.f32.gmra.mxu0 %v537_v61 }
 0x1c2   : > { %v953_v1 = vpop.f32.mrf.mxu1  ;;  %1022 = vmatprep.mubr.msk.f32.mxu0 %vm1110_vm0, %v1109_v0 }
 0x1c3   : > { %v538_v2 = vmax.f32 %v499_v63, 0.0 }
 0x1c4   : > { %v503_v3 = vpop.f32.mrf.mxu1 }
 0x1c5   : > { %v504_v4 = vadd.f32 %v1294_v37, %v503_v3  ;;  %1023 = vmatmul.mubr.f32.gmra.mxu0 %v538_v2 }
 0x1c6   : > { %v956_v5 = vpop.f32.mrf.mxu1  ;;  %1025 = vmatprep.mubr.msk.f32.mxu0 %vm1110_vm0, %v1109_v0 }
 0x1c7   : > { %v539_v6 = vmax.f32 %v504_v4, 0.0 }
 0x1c8   : > { %v508_v7 = vpop.f32.mrf.mxu1 }
 0x1c9   : > { %v509_v8 = vadd.f32 %v1294_v37, %v508_v7  ;;  %1026 = vmatmul.mubr.f32.gmra.mxu0 %v539_v6 }
 0x1ca   : > { %v959_v9 = vpop.f32.mrf.mxu1  ;;  %1028 = vmatprep.mubr.msk.f32.mxu0 %vm1110_vm0, %v1109_v0 }
 0x1cb   : > { %v540_v10 = vmax.f32 %v509_v8, 0.0 }
 0x1cc   : > { %v513_v11 = vpop.f32.mrf.mxu1 }
 0x1cd   : > { %v514_v12 = vadd.f32 %v1294_v37, %v513_v11  ;;  %1029 = vmatmul.mubr.f32.gmra.mxu0 %v540_v10 }
 0x1ce   : > { %v962_v13 = vpop.f32.mrf.mxu1  ;;  %1031 = vmatprep.mubr.msk.f32.mxu0 %vm1110_vm0, %v1109_v0 }
 0x1cf   : > { %v541_v14 = vmax.f32 %v514_v12, 0.0 }
 0x1d0   : > { %v518_v15 = vpop.f32.mrf.mxu1 }
 0x1d1   : > { %v519_v16 = vadd.f32 %v1294_v37, %v518_v15  ;;  %1032 = vmatmul.mubr.f32.gmra.mxu0 %v541_v14 }
 0x1d2   : > { %v965_v17 = vpop.f32.mrf.mxu1  ;;  %1034 = vmatprep.mubr.msk.f32.mxu0 %vm1110_vm0, %v1109_v0 }
 0x1d3   : > { %v542_v18 = vmax.f32 %v519_v16, 0.0 }
 0x1d4   : > { %v523_v19 = vpop.f32.mrf.mxu1 }
 0x1d5   : > { %v524_v20 = vadd.f32 %v1294_v37, %v523_v19  ;;  %1035 = vmatmul.mubr.f32.gmra.mxu0 %v542_v18 }
 0x1d6   : > { %v968_v21 = vpop.f32.mrf.mxu1  ;;  %1037 = vmatprep.mubr.msk.f32.mxu0 %vm1110_vm0, %v1109_v0 }
 0x1d7   : > { %v543_v22 = vmax.f32 %v524_v20, 0.0 }
 0x1d8   : > { %v528_v23 = vpop.f32.mrf.mxu1 }
 0x1d9   : > { %v529_v24 = vadd.f32 %v1294_v37, %v528_v23  ;;  %1038 = vmatmul.mubr.f32.gmra.mxu0 %v543_v22 }
 0x1da   : > { %v971_v25 = vpop.f32.mrf.mxu1  ;;  %1040 = vmatprep.mubr.msk.f32.mxu0 %vm1110_vm0, %v1109_v0 }
 0x1db   : > { %v544_v26 = vmax.f32 %v529_v24, 0.0 }
 0x1dd   : > { %1041 = vmatmul.mubr.f32.gmra.mxu0 %v544_v26 }
 0x26d   : > { %v615_v28 = vpop.f32.mrf.mxu0 }
 0x26e   : > { %v616_v29 = vadd.f32 %v785_v27, %v615_v28 }
 0x26f   : > { %v1006_v30 = vpop.f32.mrf.mxu0 }
 0x270   : > { %680 = vst.msk [vmem:[%s1338_s27] sm:$0xff] %vm679_vm2, %v616_v29 }
 0x271   : > { %v620_v0 = vpop.f32.mrf.mxu0 }
 0x272   : > { %v621_v31 = vadd.f32 %v785_v27, %v620_v0 }
 0x273   : > { %v1009_v32 = vpop.f32.mrf.mxu0 }
 0x274   : > { %681 = vst.msk [vmem:[%s1338_s27 + $0x8] sm:$0xff] %vm679_vm2, %v621_v31 }
 0x275   : > { %v625_v33 = vpop.f32.mrf.mxu0 }
 0x276   : > { %v626_v34 = vadd.f32 %v785_v27, %v625_v33 }
 0x277   : > { %v1012_v35 = vpop.f32.mrf.mxu0 }
 0x278   : > { %682 = vst.msk [vmem:[%s1338_s27 + $0x10] sm:$0xff] %vm679_vm2, %v626_v34 }
 0x279   : > { %v630_v36 = vpop.f32.mrf.mxu0 }
 0x27a   : > { %v631_v37 = vadd.f32 %v785_v27, %v630_v36 }
 0x27b   : > { %v1015_v38 = vpop.f32.mrf.mxu0 }
 0x27c   : > { %683 = vst.msk [vmem:[%s1338_s27 + $0x18] sm:$0xff] %vm679_vm2, %v631_v37 }
 0x27d   : > { %v635_v39 = vpop.f32.mrf.mxu0 }
 0x27e   : > { %v636_v40 = vadd.f32 %v785_v27, %v635_v39 }
 0x27f   : > { %v1018_v41 = vpop.f32.mrf.mxu0 }
 0x280   : > { %684 = vst.msk [vmem:[%s1338_s27 + $0x20] sm:$0xff] %vm679_vm2, %v636_v40 }
 0x281   : > { %v640_v42 = vpop.f32.mrf.mxu0 }
 0x282   : > { %v641_v43 = vadd.f32 %v785_v27, %v640_v42 }
 0x283   : > { %v1021_v44 = vpop.f32.mrf.mxu0 }
 0x284   : > { %685 = vst.msk [vmem:[%s1338_s27 + $0x28] sm:$0xff] %vm679_vm2, %v641_v43 }
 0x285   : > { %v645_v45 = vpop.f32.mrf.mxu0 }
 0x286   : > { %v646_v46 = vadd.f32 %v785_v27, %v645_v45 }
 0x287   : > { %v1024_v47 = vpop.f32.mrf.mxu0 }
 0x288   : > { %686 = vst.msk [vmem:[%s1338_s27 + $0x30] sm:$0xff] %vm679_vm2, %v646_v46 }
 0x289   : > { %v650_v48 = vpop.f32.mrf.mxu0 }
 0x28a   : > { %v651_v49 = vadd.f32 %v785_v27, %v650_v48 }
 0x28b   : > { %v1027_v50 = vpop.f32.mrf.mxu0 }
 0x28c   : > { %687 = vst.msk [vmem:[%s1338_s27 + $0x38] sm:$0xff] %vm679_vm2, %v651_v49 }
 0x28d   : > { %v655_v51 = vpop.f32.mrf.mxu0 }
 0x28e   : > { %v656_v52 = vadd.f32 %v785_v27, %v655_v51 }
 0x28f   : > { %v1030_v53 = vpop.f32.mrf.mxu0 }
 0x290   : > { %688 = vst.msk [vmem:[%s1338_s27 + $0x40] sm:$0xff] %vm679_vm2, %v656_v52 }
 0x291   : > { %v660_v54 = vpop.f32.mrf.mxu0 }
 0x292   : > { %v661_v55 = vadd.f32 %v785_v27, %v660_v54 }
 0x293   : > { %v1033_v56 = vpop.f32.mrf.mxu0 }
 0x294   : > { %689 = vst.msk [vmem:[%s1338_s27 + $0x48] sm:$0xff] %vm679_vm2, %v661_v55 }
 0x295   : > { %v665_v57 = vpop.f32.mrf.mxu0 }
 0x296   : > { %v666_v58 = vadd.f32 %v785_v27, %v665_v57 }
 0x297   : > { %v1036_v59 = vpop.f32.mrf.mxu0 }
 0x298   : > { %690 = vst.msk [vmem:[%s1338_s27 + $0x50] sm:$0xff] %vm679_vm2, %v666_v58 }
 0x299   : > { %v670_v60 = vpop.f32.mrf.mxu0 }
 0x29a   : > { %v671_v61 = vadd.f32 %v785_v27, %v670_v60 }
 0x29b   : > { %v1039_v62 = vpop.f32.mrf.mxu0 }
 0x29c   : > { %691 = vst.msk [vmem:[%s1338_s27 + $0x58] sm:$0xff] %vm679_vm2, %v671_v61 }
 0x29d   : > { %v675_v63 = vpop.f32.mrf.mxu0 }
 0x29e   : > { %v676_v1 = vadd.f32 %v785_v27, %v675_v63 }
 0x29f   : > { %v1042_v2 = vpop.f32.mrf.mxu0 }
 0x2a0   : > { %692 = vst.msk [vmem:[%s1338_s27 + $0x60] sm:$0xff] %vm679_vm2, %v676_v1 }
 0x2a1 PF: > { %s13_s9 = sadd.s32 1, %s1104_s9  }
 0x2a2   : > { %p10_p1 = scmp.ge.s32.totalorder %s13_s9, 4  }
 0x2a4   :  { %12 = sbr.rel (!%p10_p1) target bundleno = 1 (0x1), region = 63 }
 0x2a9   :  { %715 = vsyncpa [#allocation3], 1 }
 0x2aa   :  { %717 = vsyncpa [#allocation3 + $0x1], 1 }

</bundles_post_ra>
